<compile_context>
chip_gen: v6e
topology: v6e:2x2x1
jax: 0.10.0
libtpu: 0.0.40
codegen_flags: <defaults>
</compile_context>

<pallas_src>
import jax
import jax.numpy as jnp
from jax.experimental import pallas as pl
from jax.experimental.pallas import tpu as pltpu

_MIB = 1024 * 1024


def _add_kernel(pe_ref, x_ref, o_ref):
    # Pure VPU add. pe_ref either broadcasts over the batch sublanes (leading
    # dim 1) or matches x_ref exactly (row-tiled path).
    o_ref[...] = x_ref[...] + pe_ref[...]
    # TODO(synk): training-mode dropout (p=0.1) would draw a mask here with
    # pltpu.prng_seed + pltpu.stateful_bernoulli; eval-mode dropout is identity.


def _pad8(n):
    return ((n + 7) // 8) * 8


def _pad128(n):
    return ((n + 127) // 128) * 128


def _largest_divisor_at_most(n, cap):
    """Largest divisor of n that is <= cap (>= 1)."""
    cap = int(max(1, min(n, cap)))
    for d in range(cap, 0, -1):
        if n % d == 0:
            return d
    return 1


def _chip_defaults():
    """(target x-tile bytes, VMEM budget for live double-buffered blocks, vmem cap)."""
    try:
        kind = jax.devices()[0].device_kind.lower()
    except Exception:
        kind = ""
    if "v5" in kind:
        # ~0.82 TB/s HBM: 2 MiB tiles already amortize the ~0.35 us/step overhead;
        # keep footprint well under the 16 MiB default scoped limit.
        return 2 * _MIB, 12 * _MIB, 96 * _MIB
    if "v6" in kind:
        # 128 MiB physical VMEM: big tiles, raise the scoped limit explicitly.
        return 7 * _MIB, 40 * _MIB, 96 * _MIB
    if "v7" in kind:
        # ~3.2 TB/s HBM but only 64 MiB physical VMEM per TC: mid-size tiles.
        return 5 * _MIB, 32 * _MIB, 48 * _MIB
    return 4 * _MIB, 24 * _MIB, 48 * _MIB


def bert_embedding2_forward(sequence, pe, *, tile_bytes=None, donate_sequence=False):
    """out = pe[:, :S, :] + sequence  (eval-mode dropout == identity).

    sequence: [B, S, D]; pe: [1, max_len, D]. Result is in the input dtype;
    passing bf16 inputs halves HBM traffic for this purely bandwidth-bound op.
    `donate_sequence` only saves the output allocation (memory footprint), it
    does not reduce HBM traffic.
    """
    B, S, D = sequence.shape
    pe_b, max_len, pe_d = pe.shape
    assert pe_b == 1 and pe_d == D, "pe must be [1, max_len, D]"
    assert S <= max_len, "sequence length exceeds max_len of positional embedding"
    assert sequence.dtype == pe.dtype, "sequence and pe must share a dtype"

    itemsize = jnp.dtype(sequence.dtype).itemsize
    chip_tile, vmem_budget, vmem_cap = _chip_defaults()
    if tile_bytes is None:
        tile_bytes = chip_tile

    total_cols = S * D

    if D % 128 == 0 and S % 8 == 0 and B % 8 != 0:
        # ---- Row-tiled (B*S, D) layout -------------------------------------
        # Avoids padding a small batch dim up to 8 sublanes (~4x VMEM waste when
        # B = 1/2); lanes stay fully dense since D is a multiple of 128.
        x2 = sequence.reshape(B * S, D)
        pe2 = pe.reshape(max_len, D)          # only the first S rows are indexed
        per_row = D * itemsize                # bytes per row of one buffer
        tr_cap = vmem_budget // (2 * 3 * per_row)      # 2x-buffered x + out + pe
        tr_target = max(8, tile_bytes // per_row)
        tr = 8 * _largest_divisor_at_most(S // 8, min(tr_cap, tr_target) // 8)
        blocks_per_seq = S // tr
        grid = (B * S // tr,)
        # pe block repeats every `blocks_per_seq` grid steps (one period per batch
        # element); valid because tr divides S so no block crosses a batch boundary.
        in_specs = [
            pl.BlockSpec((tr, D), lambda r: (r % blocks_per_seq, 0)),
            pl.BlockSpec((tr, D), lambda r: (r, 0)),
        ]
        out_specs = pl.BlockSpec((tr, D), lambda r: (r, 0))
        out_shape = jax.ShapeDtypeStruct((B * S, D), sequence.dtype)
        footprint = 2 * 3 * tr * D * itemsize
    elif total_cols % 128 == 0:
        # ---- Lane-dense flat (B, S*D) layout with column tiling -------------
        # The :S*D window of pe is selected purely through the index_map, so the
        # full pe is never copied/sliced on the wrapper side.
        x2 = sequence.reshape(B, total_cols)
        pe2 = pe.reshape(1, max_len * D)
        # Per-column VMEM cost of one live set of blocks (sublane-padded):
        per_col = itemsize * (2 * _pad8(B) + 8)          # x + out + pe
        tl_cap = vmem_budget // (2 * per_col)
        tl_target = max(128, tile_bytes // (max(B, 1) * itemsize))
        tl = 128 * _largest_divisor_at_most(total_cols // 128,
                                            min(tl_cap, tl_target) // 128)
        grid = (total_cols // tl,)
        in_specs = [
            pl.BlockSpec((1, tl), lambda c: (0, c)),
            pl.BlockSpec((B, tl), lambda c: (0, c)),
        ]
        out_specs = pl.BlockSpec((B, tl), lambda c: (0, c))
        out_shape = jax.ShapeDtypeStruct((B, total_cols), sequence.dtype)
        footprint = 2 * tl * per_col
    else:
        # ---- Fallback: tile the sequence axis of the original 3-D shape ------
        # Block (B, TS, D) with D == full last dim is always legal; this keeps
        # double-buffering alive instead of one giant full-array block.
        x2 = sequence
        pe2 = pe
        Dp = _pad128(D)
        per_srow = itemsize * Dp * (2 * B + 1)           # x + out + pe per S-row
        if S % 8 == 0:
            ts_cap = max(8, vmem_budget // (2 * per_srow))
            ts_target = max(8, tile_bytes // max(1, B * D * itemsize))
            ts = 8 * _largest_divisor_at_most(S // 8, min(ts_cap, ts_target) // 8)
        else:
            ts = S                                       # full-dim block is legal
        grid = (S // ts,)
        in_specs = [
            pl.BlockSpec((1, ts, D), lambda s: (0, s, 0)),
            pl.BlockSpec((B, ts, D), lambda s: (0, s, 0)),
        ]
        out_specs = pl.BlockSpec((B, ts, D), lambda s: (0, s, 0))
        out_shape = jax.ShapeDtypeStruct((B, S, D), sequence.dtype)
        footprint = 2 * ts * per_srow

    vmem_limit = int(min(vmem_cap, max(16 * _MIB, footprint + 8 * _MIB)))

    out2 = pl.pallas_call(
        _add_kernel,
        out_shape=out_shape,
        grid_spec=pltpu.PrefetchScalarGridSpec(
            num_scalar_prefetch=0,
            grid=grid,
            in_specs=in_specs,
            out_specs=out_specs,
        ),
        compiler_params=pltpu.CompilerParams(
            dimension_semantics=("parallel",),   # lets the v7x megacore split the grid
            vmem_limit_bytes=vmem_limit,
        ),
        # Memory-footprint feature only (reuses the sequence buffer for the
        # output); it does not reduce HBM traffic.
        input_output_aliases=({1: 0} if donate_sequence else {}),
    )(pe2, x2)

    return out2.reshape(B, S, D)


if __name__ == "__main__":
    # Small shapes consistent with the module: batch=2, seq=8, hidden(input_dim)=32
    B, S, D = 2, 8, 32
    MAX_LEN = 16

    key = jax.random.PRNGKey(0)
    k_pe, k_x = jax.random.split(key)

    # Deterministic parameter init matching nn.init.normal_(pe, std=0.02)
    pe = 0.02 * jax.random.normal(k_pe, (1, MAX_LEN, D), dtype=jnp.float32)
    sequence = jax.random.normal(k_x, (B, S, D), dtype=jnp.float32)

    out = jax.block_until_ready(bert_embedding2_forward(sequence, pe))

    # Reference (eval-mode dropout == identity)
    ref = sequence + pe[:, :S, :]
    assert out.shape == (B, S, D)
    assert jnp.allclose(out, ref, atol=1e-6), "f32 mismatch vs reference"

    # bf16 path: halves HBM traffic for this purely bandwidth-bound op; the kernel
    # accepts it natively — opt in at the call site when the model tolerates it.
    out_bf16 = jax.block_until_ready(
        bert_embedding2_forward(sequence.astype(jnp.bfloat16),
                                pe.astype(jnp.bfloat16)))
    assert out_bf16.shape == (B, S, D)
    assert jnp.allclose(out_bf16.astype(jnp.float32), ref, atol=2e-2), "bf16 mismatch"

    print("KERNEL_OK")
</pallas_src>

<mosaic_0001>
module attributes {stable_mosaic.version = 11 : i64} {
  func.func @_add_kernel(%arg0: i32, %arg1: memref<1x256xf32, #tpu.memory_space<vmem>>, %arg2: memref<2x256xf32, #tpu.memory_space<vmem>>, %arg3: memref<2x256xf32, #tpu.memory_space<vmem>>) attributes {dimension_semantics = [#tpu.dimension_semantics<parallel>], iteration_bounds = array<i64: 1>, scalar_prefetch = 0 : i64, scratch_operands = 0 : i64, tpu.core_type = #tpu.core_type<tc>, window_params = [{transform_indices = @transform_0, window_bounds = array<i64: 1, 256>}, {transform_indices = @transform_1, window_bounds = array<i64: 2, 256>}, {transform_indices = @transform_2, window_bounds = array<i64: 2, 256>}]} {
    %c0 = arith.constant 0 : index
    %c0_0 = arith.constant 0 : index
    %0 = vector.load %arg2[%c0, %c0_0] : memref<2x256xf32, #tpu.memory_space<vmem>>, vector<2x256xf32>
    %c0_1 = arith.constant 0 : index
    %c0_2 = arith.constant 0 : index
    %1 = vector.load %arg1[%c0_1, %c0_2] : memref<1x256xf32, #tpu.memory_space<vmem>>, vector<1x256xf32>
    %2 = vector.broadcast %1 : vector<1x256xf32> to vector<2x256xf32>
    %3 = arith.addf %0, %2 : vector<2x256xf32>
    %c0_3 = arith.constant 0 : index
    %c0_4 = arith.constant 0 : index
    %4 = vector.load %arg3[%c0_3, %c0_4] : memref<2x256xf32, #tpu.memory_space<vmem>>, vector<2x256xf32>
    tpu.vector_store %arg3[%c0_3, %c0_4], %3 {strides = array<i32>} : memref<2x256xf32, #tpu.memory_space<vmem>>, vector<2x256xf32>,
    return
  }
  func.func @transform_0(%arg0: i32) -> (i32, i32) {
    %c0_i32 = arith.constant 0 : i32
    %c0_i32_0 = arith.constant 0 : i32
    return %c0_i32, %arg0 : i32, i32
  }
  func.func @transform_1(%arg0: i32) -> (i32, i32) {
    %c0_i32 = arith.constant 0 : i32
    %c0_i32_0 = arith.constant 0 : i32
    return %c0_i32, %arg0 : i32, i32
  }
  func.func @transform_2(%arg0: i32) -> (i32, i32) {
    %c0_i32 = arith.constant 0 : i32
    %c0_i32_0 = arith.constant 0 : i32
    return %c0_i32, %arg0 : i32, i32
  }
}

</mosaic_0001>

<bundles_post_ra>
// kernel: tpu_custom_call.1
= control target key start
LH: loop header
LB: loop body
LE: loop exit
PB: predicated region body
PF: predicated region fallthrough
CT: control target
= control target key end

     0   :  { %7 = vsyncpa [#allocation3], 0  ;;  %s172_s0 = inlined_call_operand.hbm [shape: f32[1,512], index: 0, kind: input, shape index: {}]   ;;  %s173_s1 = inlined_call_operand.hbm [shape: f32[2,256], index: 1, kind: input, shape index: {}]   ;;  %s174_s2 = inlined_call_operand.hbm [shape: f32[2,256], index: 2, kind: output, shape index: {}]  }
   0x1   :  { %8 = vsyncpa [#allocation6], 0 }
   0x2   :  { %9 = vsyncpa [#allocation4], 0  ;;  %s144_s9 = smov [#allocation2]   ;;  %s145_s11 = smov [#allocation5]  }
   0x3   :  { %s16_s10 = sshll.u32 %s144_s9, 4  ;;  %s26_s12 = sshll.u32 %s145_s11, 4  ;;  %s17_s10 = int_to_ptr.vmem [resolvable:$true] %s16_s10  ;;  %s27_s12 = int_to_ptr.vmem [resolvable:$true] %s26_s12 }
   0x4   :  { %s86_s13 = scalar_lea.vmem %s17_s10, 32  ;;  %p91_p1 = scmp.lt.s32.totalorder %s17_s10, %s17_s10 }
   0x5   :  { %p87_p0 = scmp.ne.s32.totalorder %s17_s10, %s86_s13  ;;  %p92_p2 = scmp.lt.s32.totalorder %s86_s13, %s86_s13 }
   0x7   :  { %p93_p3 = por %p92_p2, %p91_p1 }
   0x9   :  { %p94_p4 = pnand %p93_p3, %p87_p0 }
   0xb   :  { %97 = shalt.err (!%p94_p4)
}
   0xc   :  { %19 = dma.hbm_to_vmem [thread:$0]  %s172_s0, 32, %s17_s10, [#allocation3]  }
   0xd   :  { %s106_s16 = scalar_lea.vmem %s27_s12, 64  ;;  %p111_p6 = scmp.lt.s32.totalorder %s27_s12, %s27_s12 }
   0xe   :  { %p107_p5 = scmp.ne.s32.totalorder %s27_s12, %s106_s16  ;;  %p112_p7 = scmp.lt.s32.totalorder %s106_s16, %s106_s16 }
  0x10   :  { %p113_p8 = por %p112_p7, %p111_p6 }
  0x12   :  { %p114_p9 = pnand %p113_p8, %p107_p5 }
  0x14   :  { %117 = shalt.err (!%p114_p9)
}
  0x15   :  { %29 = dma.hbm_to_vmem [thread:$0]  %s173_s1, 64, %s27_s12, [#allocation6]  }
  0x16   :  { %138 = dma.done.wait [#allocation3], 32  }
  0x17   :  { %139 = vsyncadd [#allocation3], 4294967264 }
  0x18   :  { %140 = dma.done.wait [#allocation6], 64  }
  0x19   :  { %141 = vsyncadd [#allocation6], 4294967232  ;;  %v39_v0 = vlaneseq  ;;  %v146_v1 = vmov 1983009808   ;;  %v37_v7 = vld [vmem:[#allocation2] sm:$0x3] }
  0x1a   :  { %v49_v2 = vunpack.c.l.s4 %v146_v1  ;;  %v36_v12 = vld [vmem:[#allocation5] sm:$0xf]  ;;  %s147_s0 = smov [#allocation7]  }
  0x1b   :  { %v40_v3 = vshrl.u32 %v39_v0, 7  ;;  %s64_s19 = sshll.u32 %s147_s0, 4  ;;  %s65_s19 = int_to_ptr.vmem [resolvable:$true] %s64_s19 }
  0x1c   :  { %v50_v6 = vunpack.c.0.s8 %v49_v2  ;;  %s118_s1 = scalar_lea.vmem %s65_s19, 64  ;;  %p123_p11 = scmp.lt.s32.totalorder %s65_s19, %s65_s19 }
  0x1d   :  { %v41_v4 = vsub.s32 0, %v40_v3  ;;  %v45_v5 = vsub.s32 1, %v40_v3  ;;  %p119_p10 = scmp.ne.s32.totalorder %s65_s19, %s118_s1  ;;  %p124_p12 = scmp.lt.s32.totalorder %s118_s1, %s118_s1 }
  0x1e   :  { %v53_v10 = vsub.s32 %v50_v6, %v40_v3 }
  0x1f   :  { %v42_v8 = vrot.slane %v37_v7, %v41_v4  ;;  %v46_v9 = vrot.slane %v37_v7, %v45_v5  ;;  %p125_p13 = por %p124_p12, %p123_p11 }
  0x21   :  { %v47_v11 = vcombine.low %v42_v8, %v46_v9  ;;  %p126_p0 = pnand %p125_p13, %p119_p10 }
  0x23   :  { %v54_v13 = vrot.slane %v47_v11, %v53_v10 }
  0x25   :  { %v56_v14 = vadd.f32 %v54_v13, %v36_v12 }
  0x27   :  { %57 = vst [vmem:[#allocation7] sm:$0xf] %v56_v14 }
  0x28   :  { %129 = shalt.err (!%p126_p0)
}
  0x29   :  { %67 = dma.vmem_to_hbm [thread:$0]  %s65_s19, 64, %s174_s2, [#allocation4]  }
  0x2a   :  { %142 = dma.done.wait [#allocation4], 64  }
  0x2b   :  { %143 = vsyncadd [#allocation4], 4294967232 }
  0x2c   :  { %71 = vsyncpa [#allocation3], 1 }
  0x2d   :  { %72 = vsyncpa [#allocation6], 1 }
  0x2e   :  { %73 = vsyncpa [#allocation4], 1 }

</bundles_post_ra>
